<compile_context>
chip_gen: v7x
topology: tpu7x:2x2x1
jax: 0.10.0
libtpu: 0.0.40
codegen_flags: <defaults>
</compile_context>

<pallas_src>
import functools
import math

import jax
import jax.numpy as jnp
import numpy as np
from jax.experimental import pallas as pl
from jax.experimental.pallas import tpu as pltpu


# ---------------------------------------------------------------------------
# Shared framing / layout helpers
# ---------------------------------------------------------------------------
def _frame_layout(t, n_fft, hop, tm_max, lane_w):
    """Static tiling decisions shared by the STFT and the fused-loss kernels."""
    # TODO(synk): in-kernel framing requires hop | n_fft (always true for the
    # module's hop = n_fft // 4 default); a gather fallback would be needed
    # for arbitrary hop.
    assert n_fft % hop == 0, "in-kernel framing requires hop to divide n_fft"
    r = n_fft // hop
    pad = n_fft // 2
    n_frames = 1 + (t + 2 * pad - n_fft) // hop
    # frame-tile rows: as large as comfortably fits (MXU rows / step overhead),
    # multiple of 8, capped so the (tm, lane_w) f32 intermediates stay small.
    tm_cap = max(8, (131072 // max(lane_w, 1)) // 8 * 8)
    tm_max = max(8, 8 * (tm_max // 8))
    tm = min(tm_max, tm_cap, pl.cdiv(n_frames, 8) * 8)
    n_tiles = pl.cdiv(n_frames, tm)
    n_frames_pad = n_tiles * tm
    # rows needed: frames [0, n_frames_pad) each use rows i .. i+r-1,
    # and the whole padded signal must fit.
    R_pad = max(n_frames_pad + r - 1, pl.cdiv(t + 2 * pad, hop))
    return pad, n_frames, tm, n_tiles, n_frames_pad, r, R_pad


def _to_rows(x, pad, R_pad, hop):
    """(..., t) -> (B, R_pad, hop): reflect-pad (center=True) + hop-reshape."""
    t = x.shape[-1]
    xb = x.reshape(-1, t).astype(jnp.float32)
    xp = jnp.pad(xb, ((0, 0), (pad, pad)), mode="reflect")
    T_pad = R_pad * hop
    xp = jnp.pad(xp, ((0, 0), (0, T_pad - xp.shape[-1])))
    return xp.reshape(xp.shape[0], R_pad, hop)


# ---------------------------------------------------------------------------
# Fused windowed DFT basis (hoisted out of the per-call path)
# ---------------------------------------------------------------------------
def _build_fused_basis(n_fft, hop, f_pad, window, dtype):
    n_freq = n_fft // 2 + 1
    if window is None:
        n = np.arange(n_fft, dtype=np.float64)
        window = 0.5 - 0.5 * np.cos(2.0 * np.pi * n / n_fft)   # periodic Hann
    else:
        window = np.asarray(window, dtype=np.float64)
    n = np.arange(n_fft, dtype=np.float64)[:, None]
    f = np.arange(n_freq, dtype=np.float64)[None, :]
    ang = 2.0 * np.pi * n * f / n_fft
    scale = 1.0 / math.sqrt(n_fft)                              # normalized=True
    wr = window[:, None] * np.cos(ang) * scale
    wi = -window[:, None] * np.sin(ang) * scale
    fused = np.zeros((n_fft, 2 * f_pad), dtype=np.float32)
    fused[:, :n_freq] = wr
    fused[:, f_pad:f_pad + n_freq] = wi
    r = n_fft // hop
    return jnp.asarray(fused.reshape(r, hop, 2 * f_pad), dtype=dtype)


@functools.lru_cache(maxsize=None)
def _cached_default_basis(n_fft, hop, f_pad, dtype_name):
    return _build_fused_basis(n_fft, hop, f_pad, None, jnp.dtype(dtype_name))


# ---------------------------------------------------------------------------
# Kernel 1: plain STFT (torch.stft equivalent, spectra written to HBM)
# ---------------------------------------------------------------------------
def _stft_kernel(x_ref, w_ref, out_ref, *, tm, r, compute_dtype):
    """x_ref (1,R,hop) hop-reshaped signal; w_ref (r,hop,2F) fused basis;
    out_ref (1,tm,2F) = [real | imag] spectrum of tm frames."""
    j = pl.program_id(1)
    q = pl.multiple_of(j * tm, 8)
    acc = None
    for k in range(r):                       # frame[i] = rows q+i .. q+i+r-1
        xs = x_ref[0, pl.ds(q + k, tm), :].astype(compute_dtype)
        part = jnp.dot(xs, w_ref[k], preferred_element_type=jnp.float32)
        acc = part if acc is None else acc + part
    out_ref[0] = acc


def stft_pallas(x, n_fft, hop=None, window=None, *, tm_max=256,
                compute_dtype=jnp.bfloat16):
    """Equivalent of Stft(n_fft, hop, window).forward(x) -> complex64."""
    hop = hop or n_fft // 4
    n_freq = n_fft // 2 + 1
    f_pad = pl.cdiv(n_freq, 128) * 128
    t = x.shape[-1]
    sh = x.shape[:-1]
    pad, n_frames, tm, n_tiles, n_frames_pad, r, R_pad = _frame_layout(
        t, n_fft, hop, tm_max, 2 * f_pad)
    xrows = _to_rows(x, pad, R_pad, hop)
    B = xrows.shape[0]

    if window is None:
        basis = _cached_default_basis(n_fft, hop, f_pad, jnp.dtype(compute_dtype).name)
    else:
        basis = _build_fused_basis(n_fft, hop, f_pad, window, compute_dtype)

    out = pl.pallas_call(
        functools.partial(_stft_kernel, tm=tm, r=r, compute_dtype=compute_dtype),
        out_shape=jax.ShapeDtypeStruct((B, n_frames_pad, 2 * f_pad), jnp.float32),
        grid=(B, n_tiles),
        in_specs=[
            pl.BlockSpec((1, R_pad, hop), lambda b, j: (b, 0, 0)),
            pl.BlockSpec((r, hop, 2 * f_pad), lambda b, j: (0, 0, 0)),
        ],
        out_specs=pl.BlockSpec((1, tm, 2 * f_pad), lambda b, j: (b, j, 0)),
        compiler_params=pltpu.CompilerParams(
            dimension_semantics=("parallel", "parallel")),
    )(xrows, basis)

    real = out[:, :n_frames, :n_freq]
    imag = out[:, :n_frames, f_pad:f_pad + n_freq]
    spec = jax.lax.complex(real, imag)            # (B, n_frames, n_freq)
    spec = jnp.swapaxes(spec, -1, -2)             # torch.stft layout (F, T)
    return spec.reshape(*sh, n_freq, n_frames)


# ---------------------------------------------------------------------------
# Kernel 2: fused MultiResSpecLoss partial sums (spectra never leave VMEM)
# ---------------------------------------------------------------------------
def _mrsl_tile_kernel(xe_ref, xt_ref, w_ref, out_ref, *, tm, r, f_pad, n_frames,
                      gamma, with_complex, compute_dtype):
    """Per (batch-row, frame-tile): compute both spectra on the MXU, then the
    magnitude-MSE and complex-MSE partial sums, accumulated over frame tiles
    into out_ref (1, 2, 8, 128) (scalar broadcast into the block)."""
    j = pl.program_id(1)
    q = pl.multiple_of(j * tm, 8)

    ye = None
    yt = None
    for k in range(r):
        wk = w_ref[k]
        fe = xe_ref[0, pl.ds(q + k, tm), :].astype(compute_dtype)
        ft = xt_ref[0, pl.ds(q + k, tm), :].astype(compute_dtype)
        pe = jnp.dot(fe, wk, preferred_element_type=jnp.float32)
        pt = jnp.dot(ft, wk, preferred_element_type=jnp.float32)
        ye = pe if ye is None else ye + pe
        yt = pt if yt is None else yt + pt

    yr, yi = ye[:, :f_pad], ye[:, f_pad:]
    sr, si = yt[:, :f_pad], yt[:, f_pad:]
    ya2 = yr * yr + yi * yi
    sa2 = sr * sr + si * si

    if gamma != 1.0:
        # |Y|^gamma == (|Y|^2)^(gamma/2); clamp equals torch's clamp_min(1e-12)
        ya2c = jnp.maximum(ya2, 1e-24)
        sa2c = jnp.maximum(sa2, 1e-24)
        yag = jnp.exp((0.5 * gamma) * jnp.log(ya2c))
        sag = jnp.exp((0.5 * gamma) * jnp.log(sa2c))
    else:
        yag = jnp.sqrt(ya2)
        sag = jnp.sqrt(sa2)

    # mask frames >= n_frames (tile padding); padded freq lanes are exactly 0
    # for both spectra so they already contribute 0.
    frame_ids = q + jax.lax.broadcasted_iota(jnp.int32, (tm, 1), 0)
    valid = (frame_ids < n_frames).astype(jnp.float32)

    mag_sq = (yag - sag) ** 2
    mag_sse = jnp.sum(jnp.sum(mag_sq * valid, axis=0))

    if with_complex:
        if gamma != 1.0:
            # rescale so |Y'| = |Y|^gamma, keeping the phase (== |Y|^g * e^{i ang})
            # TODO(synk): torch's angle(0)=0 gives (|Y|^g, 0) for exactly-zero
            # bins; here the phasor is 0 there (measure-zero difference).
            sy = yag * jax.lax.rsqrt(jnp.maximum(ya2, 1e-24))
            ss = sag * jax.lax.rsqrt(jnp.maximum(sa2, 1e-24))
            dr = yr * sy - sr * ss
            di = yi * sy - si * ss
        else:
            dr = yr - sr
            di = yi - si
        cpl_sse = jnp.sum(jnp.sum((dr * dr + di * di) * valid, axis=0))
    else:
        cpl_sse = jnp.float32(0.0)

    @pl.when(j == 0)
    def _():
        out_ref[0, 0] = jnp.full((8, 128), mag_sse, jnp.float32)
        out_ref[0, 1] = jnp.full((8, 128), cpl_sse, jnp.float32)

    @pl.when(j > 0)
    def _():
        out_ref[0, 0] += jnp.full((8, 128), mag_sse, jnp.float32)
        out_ref[0, 1] += jnp.full((8, 128), cpl_sse, jnp.float32)


def multi_res_spec_loss(input_td, target_td, n_ffts, gamma=0.3, factor=1.0,
                        f_complex=1.0, *, tm_max=256, compute_dtype=jnp.bfloat16):
    """Fused MultiResSpecLoss.forward(input_td, target_td) on time-domain signals."""
    assert input_td.shape == target_td.shape
    n_ffts = tuple(n_ffts)
    if f_complex is None or f_complex == 0:
        fc_list = None
    elif isinstance(f_complex, (list, tuple)):
        fc_list = [float(v) for v in f_complex]
    else:
        fc_list = [float(f_complex)] * len(n_ffts)
    with_complex = fc_list is not None

    t = input_td.shape[-1]
    n_rows = int(np.prod(input_td.shape[:-1])) if input_td.ndim > 1 else 1
    loss = jnp.zeros((), jnp.float32)

    for i, n_fft in enumerate(n_ffts):
        hop = n_fft // 4
        n_freq = n_fft // 2 + 1
        f_pad = pl.cdiv(n_freq, 128) * 128
        pad, n_frames, tm, n_tiles, _, r, R_pad = _frame_layout(
            t, n_fft, hop, tm_max, 2 * f_pad)
        xe = _to_rows(input_td, pad, R_pad, hop)
        xt = _to_rows(target_td, pad, R_pad, hop)
        B = xe.shape[0]
        basis = _cached_default_basis(n_fft, hop, f_pad, jnp.dtype(compute_dtype).name)

        out = pl.pallas_call(
            functools.partial(_mrsl_tile_kernel, tm=tm, r=r, f_pad=f_pad,
                              n_frames=n_frames, gamma=float(gamma),
                              with_complex=with_complex,
                              compute_dtype=compute_dtype),
            out_shape=jax.ShapeDtypeStruct((B, 2, 8, 128), jnp.float32),
            grid=(B, n_tiles),
            in_specs=[
                pl.BlockSpec((1, R_pad, hop), lambda b, j: (b, 0, 0)),
                pl.BlockSpec((1, R_pad, hop), lambda b, j: (b, 0, 0)),
                pl.BlockSpec((r, hop, 2 * f_pad), lambda b, j: (0, 0, 0)),
            ],
            out_specs=pl.BlockSpec((1, 2, 8, 128), lambda b, j: (b, 0, 0, 0)),
            compiler_params=pltpu.CompilerParams(
                dimension_semantics=("parallel", "arbitrary")),
        )(xe, xt, basis)

        n_valid = n_rows * n_freq * n_frames
        mag_sse = jnp.sum(out[:, 0, 0, 0])
        loss = loss + float(factor) * mag_sse / n_valid
        if with_complex:
            # F.mse_loss(view_as_real(Y), view_as_real(S)) == 0.5*mean(|Y-S|^2)
            cpl_sse = jnp.sum(out[:, 1, 0, 0])
            loss = loss + 0.5 * fc_list[i] * cpl_sse / n_valid
    return loss


# ---------------------------------------------------------------------------
# SpectralLoss on complex spectra (purely elementwise -> left to XLA fusion)
# ---------------------------------------------------------------------------
def spectral_loss(input_spec, target_spec, gamma=0.6, factor_magnitude=1.0,
                  factor_complex=1.0, factor_under=1.0):
    ia = jnp.abs(input_spec)
    ta = jnp.abs(target_spec)
    if gamma != 1:
        ia = jnp.maximum(ia, 1e-12) ** gamma
        ta = jnp.maximum(ta, 1e-12) ** gamma
    tmp = (ia - ta) ** 2
    if factor_under != 1:
        tmp = tmp * jnp.where(ia < ta, factor_under, 1.0)
    loss = jnp.mean(tmp) * factor_magnitude
    if factor_complex > 0:
        if gamma != 1:
            ic = ia * jnp.exp(1j * jnp.angle(input_spec))
            tc = ta * jnp.exp(1j * jnp.angle(target_spec))
        else:
            ic, tc = input_spec, target_spec
        loss = loss + 0.5 * jnp.mean(jnp.abs(ic - tc) ** 2) * factor_complex
    return loss


# ---------------------------------------------------------------------------
# Pure-JAX references (torch.stft defaults) for validation
# ---------------------------------------------------------------------------
def _reference_stft(x, n_fft, hop):
    n = jnp.arange(n_fft, dtype=jnp.float32)
    window = 0.5 - 0.5 * jnp.cos(2.0 * jnp.pi * n / n_fft)
    t = x.shape[-1]
    sh = x.shape[:-1]
    xb = x.reshape(-1, t).astype(jnp.float32)
    pad = n_fft // 2
    xp = jnp.pad(xb, ((0, 0), (pad, pad)), mode="reflect")
    n_frames = 1 + (xp.shape[-1] - n_fft) // hop
    idx = jnp.arange(n_frames)[:, None] * hop + jnp.arange(n_fft)[None, :]
    frames = xp[:, idx] * window[None, None, :]
    spec = jnp.fft.rfft(frames, n=n_fft, axis=-1) / math.sqrt(n_fft)
    spec = jnp.swapaxes(spec, -1, -2)
    return spec.reshape(*sh, n_fft // 2 + 1, n_frames)


def _reference_mrsl(x, s, n_ffts, gamma, factor, f_complex):
    loss = jnp.zeros((), jnp.float32)
    for n_fft in n_ffts:
        hop = n_fft // 4
        Y = _reference_stft(x, n_fft, hop)
        S = _reference_stft(s, n_fft, hop)
        Ya, Sa = jnp.abs(Y), jnp.abs(S)
        if gamma != 1:
            Ya = jnp.maximum(Ya, 1e-12) ** gamma
            Sa = jnp.maximum(Sa, 1e-12) ** gamma
        loss = loss + factor * jnp.mean((Ya - Sa) ** 2)
        if f_complex:
            if gamma != 1:
                Y = Ya * jnp.exp(1j * jnp.angle(Y))
                S = Sa * jnp.exp(1j * jnp.angle(S))
            loss = loss + 0.5 * f_complex * jnp.mean(jnp.abs(Y - S) ** 2)
    return loss


if __name__ == "__main__":
    key = jax.random.PRNGKey(0)
    k1, k2 = jax.random.split(key)
    # time-domain signals (B, C, T) as produced by Istft inside Loss.forward
    x = jax.random.normal(k1, (2, 4, 256), dtype=jnp.float32)
    target = x + 0.1 * jax.random.normal(k2, x.shape, dtype=jnp.float32)

    # --- Stft module equivalent --------------------------------------------
    n_fft, hop = 64, 16
    ref = _reference_stft(x, n_fft, hop)
    out_f32 = jax.block_until_ready(stft_pallas(x, n_fft, hop, compute_dtype=jnp.float32))
    assert out_f32.shape == ref.shape == (2, 4, n_fft // 2 + 1, 1 + 256 // hop)
    assert out_f32.dtype == jnp.complex64
    assert jnp.allclose(out_f32, ref, rtol=1e-4, atol=1e-4)
    out_bf16 = jax.block_until_ready(stft_pallas(x, n_fft, hop))
    assert jnp.allclose(out_bf16, ref, rtol=2e-2, atol=2e-2)

    # --- fused MultiResSpecLoss ----------------------------------------------
    n_ffts = (64, 96)
    ref_loss = _reference_mrsl(x, target, n_ffts, gamma=0.3, factor=1.0, f_complex=1.0)
    fused_f32 = jax.block_until_ready(
        multi_res_spec_loss(x, target, n_ffts, gamma=0.3, factor=1.0,
                            f_complex=1.0, compute_dtype=jnp.float32))
    assert jnp.allclose(fused_f32, ref_loss, rtol=1e-3, atol=1e-6), (fused_f32, ref_loss)

    ref_loss_g1 = _reference_mrsl(x, target, (64,), gamma=1.0, factor=1.0, f_complex=1.0)
    fused_g1 = jax.block_until_ready(
        multi_res_spec_loss(x, target, (64,), gamma=1.0, compute_dtype=jnp.float32))
    assert jnp.allclose(fused_g1, ref_loss_g1, rtol=1e-3, atol=1e-6)

    fused_bf16 = jax.block_until_ready(multi_res_spec_loss(x, target, n_ffts))
    assert jnp.isfinite(fused_bf16)
    same = jax.block_until_ready(multi_res_spec_loss(x, x, n_ffts))
    assert float(same) < 1e-12

    # --- SpectralLoss on complex spectra (elementwise, plain JAX) ------------
    spec_t = stft_pallas(target, n_fft, hop, compute_dtype=jnp.float32)
    sl = jax.block_until_ready(spectral_loss(out_f32, spec_t, gamma=0.6))
    assert jnp.isfinite(sl)

    print("KERNEL_OK")
</pallas_src>

<mosaic_0001>
module attributes {stable_mosaic.version = 11 : i64} {
  func.func @_stft_kernel(%arg0: i32, %arg1: i32, %arg2: memref<1x27x16xf32, #tpu.memory_space<vmem>>, %arg3: memref<4x16x256xf32, #tpu.memory_space<vmem>>, %arg4: memref<1x24x256xf32, #tpu.memory_space<vmem>>) attributes {dimension_semantics = [#tpu.dimension_semantics<parallel>, #tpu.dimension_semantics<parallel>], iteration_bounds = array<i64: 8, 1>, scalar_prefetch = 0 : i64, scratch_operands = 0 : i64, tpu.core_type = #tpu.core_type<tc>, window_params = [{transform_indices = @transform_0, window_bounds = array<i64: 1, 27, 16>}, {pipeline_mode = #tpu.pipeline_mode<synchronous>, transform_indices = @transform_1, window_bounds = array<i64: 4, 16, 256>}, {transform_indices = @transform_2, window_bounds = array<i64: 1, 24, 256>}]} {
    %c24_i32 = arith.constant 24 : i32
    %0 = arith.muli %arg1, %c24_i32 : i32
    %1 = tpu.assume_multiple %0, 8 : i32
    %c0_i32 = arith.constant 0 : i32
    %2 = arith.addi %1, %c0_i32 : i32
    %c0 = arith.constant 0 : index
    %3 = arith.index_cast %2 : i32 to index
    %c0_0 = arith.constant 0 : index
    %4 = vector.load %arg2[%c0, %3, %c0_0] : memref<1x27x16xf32, #tpu.memory_space<vmem>>, vector<1x24x16xf32>
    %5 = vector.shape_cast %4 : vector<1x24x16xf32> to vector<24x16xf32>
    %c0_1 = arith.constant 0 : index
    %c0_2 = arith.constant 0 : index
    %c0_3 = arith.constant 0 : index
    %6 = vector.load %arg3[%c0_1, %c0_2, %c0_3] : memref<4x16x256xf32, #tpu.memory_space<vmem>>, vector<1x16x256xf32>
    %7 = vector.shape_cast %6 : vector<1x16x256xf32> to vector<16x256xf32>
    %cst = arith.constant dense<0.000000e+00> : vector<24x256xf32>
    %8 = tpu.matmul %5, %7, %cst {dimension_numbers = #tpu.dot_dimension_numbers<[1], [0], [0], [1], [0, 0, 1, 1], [], []>} : vector<24x16xf32>, vector<16x256xf32>, vector<24x256xf32> -> vector<24x256xf32>
    %c1_i32 = arith.constant 1 : i32
    %9 = arith.addi %1, %c1_i32 : i32
    %c0_4 = arith.constant 0 : index
    %10 = arith.index_cast %9 : i32 to index
    %c0_5 = arith.constant 0 : index
    %11 = vector.load %arg2[%c0_4, %10, %c0_5] : memref<1x27x16xf32, #tpu.memory_space<vmem>>, vector<1x24x16xf32>
    %12 = vector.shape_cast %11 : vector<1x24x16xf32> to vector<24x16xf32>
    %c1 = arith.constant 1 : index
    %c0_6 = arith.constant 0 : index
    %c0_7 = arith.constant 0 : index
    %13 = vector.load %arg3[%c1, %c0_6, %c0_7] : memref<4x16x256xf32, #tpu.memory_space<vmem>>, vector<1x16x256xf32>
    %14 = vector.shape_cast %13 : vector<1x16x256xf32> to vector<16x256xf32>
    %cst_8 = arith.constant dense<0.000000e+00> : vector<24x256xf32>
    %15 = tpu.matmul %12, %14, %cst_8 {dimension_numbers = #tpu.dot_dimension_numbers<[1], [0], [0], [1], [0, 0, 1, 1], [], []>} : vector<24x16xf32>, vector<16x256xf32>, vector<24x256xf32> -> vector<24x256xf32>
    %16 = arith.addf %8, %15 : vector<24x256xf32>
    %c2_i32 = arith.constant 2 : i32
    %17 = arith.addi %1, %c2_i32 : i32
    %c0_9 = arith.constant 0 : index
    %18 = arith.index_cast %17 : i32 to index
    %c0_10 = arith.constant 0 : index
    %19 = vector.load %arg2[%c0_9, %18, %c0_10] : memref<1x27x16xf32, #tpu.memory_space<vmem>>, vector<1x24x16xf32>
    %20 = vector.shape_cast %19 : vector<1x24x16xf32> to vector<24x16xf32>
    %c2 = arith.constant 2 : index
    %c0_11 = arith.constant 0 : index
    %c0_12 = arith.constant 0 : index
    %21 = vector.load %arg3[%c2, %c0_11, %c0_12] : memref<4x16x256xf32, #tpu.memory_space<vmem>>, vector<1x16x256xf32>
    %22 = vector.shape_cast %21 : vector<1x16x256xf32> to vector<16x256xf32>
    %cst_13 = arith.constant dense<0.000000e+00> : vector<24x256xf32>
    %23 = tpu.matmul %20, %22, %cst_13 {dimension_numbers = #tpu.dot_dimension_numbers<[1], [0], [0], [1], [0, 0, 1, 1], [], []>} : vector<24x16xf32>, vector<16x256xf32>, vector<24x256xf32> -> vector<24x256xf32>
    %24 = arith.addf %16, %23 : vector<24x256xf32>
    %c3_i32 = arith.constant 3 : i32
    %25 = arith.addi %1, %c3_i32 : i32
    %c0_14 = arith.constant 0 : index
    %26 = arith.index_cast %25 : i32 to index
    %c0_15 = arith.constant 0 : index
    %27 = vector.load %arg2[%c0_14, %26, %c0_15] : memref<1x27x16xf32, #tpu.memory_space<vmem>>, vector<1x24x16xf32>
    %28 = vector.shape_cast %27 : vector<1x24x16xf32> to vector<24x16xf32>
    %c3 = arith.constant 3 : index
    %c0_16 = arith.constant 0 : index
    %c0_17 = arith.constant 0 : index
    %29 = vector.load %arg3[%c3, %c0_16, %c0_17] : memref<4x16x256xf32, #tpu.memory_space<vmem>>, vector<1x16x256xf32>
    %30 = vector.shape_cast %29 : vector<1x16x256xf32> to vector<16x256xf32>
    %cst_18 = arith.constant dense<0.000000e+00> : vector<24x256xf32>
    %31 = tpu.matmul %28, %30, %cst_18 {dimension_numbers = #tpu.dot_dimension_numbers<[1], [0], [0], [1], [0, 0, 1, 1], [], []>} : vector<24x16xf32>, vector<16x256xf32>, vector<24x256xf32> -> vector<24x256xf32>
    %32 = arith.addf %24, %31 : vector<24x256xf32>
    %c0_19 = arith.constant 0 : index
    %c0_20 = arith.constant 0 : index
    %c0_21 = arith.constant 0 : index
    %33 = vector.load %arg4[%c0_19, %c0_20, %c0_21] : memref<1x24x256xf32, #tpu.memory_space<vmem>>, vector<1x24x256xf32>
    %34 = vector.shape_cast %33 : vector<1x24x256xf32> to vector<24x256xf32>
    %35 = vector.shape_cast %32 : vector<24x256xf32> to vector<1x24x256xf32>
    tpu.vector_store %arg4[%c0_19, %c0_20, %c0_21], %35 {strides = array<i32>} : memref<1x24x256xf32, #tpu.memory_space<vmem>>, vector<1x24x256xf32>,
    return
  }
  func.func @transform_0(%arg0: i32, %arg1: i32) -> (i32, i32, i32) {
    %c0_i32 = arith.constant 0 : i32
    %c0_i32_0 = arith.constant 0 : i32
    %c0_i32_1 = arith.constant 0 : i32
    return %arg0, %c0_i32, %c0_i32_0 : i32, i32, i32
  }
  func.func @transform_1(%arg0: i32, %arg1: i32) -> (i32, i32, i32) {
    %c0_i32 = arith.constant 0 : i32
    %c0_i32_0 = arith.constant 0 : i32
    %c0_i32_1 = arith.constant 0 : i32
    %c0_i32_2 = arith.constant 0 : i32
    return %c0_i32, %c0_i32_0, %c0_i32_1 : i32, i32, i32
  }
  func.func @transform_2(%arg0: i32, %arg1: i32) -> (i32, i32, i32) {
    %c0_i32 = arith.constant 0 : i32
    %c0_i32_0 = arith.constant 0 : i32
    return %arg0, %arg1, %c0_i32 : i32, i32, i32
  }
}

</mosaic_0001>

<bundles_post_ra>
// kernel: tpu_custom_call.1
= control target key start
LH: loop header
LB: loop body
LE: loop exit
PB: predicated region body
PF: predicated region fallthrough
CT: control target
= control target key end

     0   :  { %7 = vsyncpa [#allocation3], 0  ;;  %s1114_s0 = inlined_call_operand.vmem [shape: f32[8,27,16], index: 0, kind: input, shape index: {}]   ;;  %s1115_s1 = inlined_call_operand.vmem [shape: f32[4,16,256], index: 1, kind: input, shape index: {}]   ;;  %s1116_s2 = inlined_call_operand.hbm [shape: f32[8,24,256], index: 2, kind: output, shape index: {}]  }
   0x1   :  { %9 = vsyncpa [#allocation3 + $0x1], 0  ;;  %s921_s9 = smov 0   ;;  %s923_s10 = smov 0  }
   0x2   :  { %s925_s11 = smov 0   ;;  %s927_s12 = smov 0  }
   0x3   :  { %s929_s13 = smov 0   ;;  %s931_s14 = smov 0  }
   0x4 LB: > { %s684_s15 = sadd.s32 4294967295, %s900_s14   ;;  %s685_s16 = sadd.s32 4294967294, %s900_s14   ;;  %s900_s14 = sphi %s931_s14, %s15_s14   ;;  %s896_s13 = sphi %s929_s13, %s1123_s13   ;;  %s892_s12 = sphi %s927_s12, %s1122_s12   ;;  %s888_s11 = sphi %s925_s11, %s1121_s11   ;;  %s884_s10 = sphi %s923_s10, %s1120_s10   ;;  %s880_s9 = sphi %s921_s9, %s1119_s9  }
   0x5   : > { %s27_s17 = sadd.s32 1, %s896_s13  ;;  %s83_s18 = sadd.s32 1, %s888_s11 }
   0x6   : > { %p29_p0 = scmp.ge.s32.totalorder %s27_s17, 8  ;;  %p93_p1 = scmp.ne.s32.totalorder %s888_s11, %s884_s10 }
   0x7   : > { %p94_p2 = scmp.eq.s32.totalorder %s684_s15, 7  ;;  %p99_p3 = scmp.ne.s32.totalorder %s884_s10, %s880_s9 }
   0x8   : > { %s1125_s17 = smov (%p29_p0, %s27_s17), 0  ;;  %p100_p5 = scmp.eq.s32.totalorder %s685_s16, 7 }
   0x9   : > { %p961_p4 = por %p94_p2, %p93_p1  ;;  %s78_s20 = ssub.s32 %s896_s13, %s1125_s17 }
   0xa   : > { %p688_p6 = scmp.ge.s32.totalorder %s900_s14, 1  ;;  %p81_p7 = scmp.eq.s32.totalorder %s78_s20, 0 }
   0xb   : > { %p968_p8 = por %p100_p5, %p99_p3  ;;  %p129_p9 = scmp.lt.s32.totalorder %s900_s14, 9 }
   0xc   : > { %s974_s22 = scalar_select %p81_p7, %s888_s11, %s83_s18  }
   0xd   : > { %p130_p10 = pnand %p688_p6, %p129_p9 }
   0xe   : > { %v695_v0 = vld [vmem:[%s1115_s1 + $0x28] sm:$0xff] (!%p130_p10)  ;;  %v697_v1 = vld [vmem:[%s1115_s1 + $0x38] sm:$0xff] (!%p130_p10)  ;;  %p151_p11 = scmp.lt.s32.totalorder (!%p130_p10), %s892_s12, 7  ;;  %v694_v5 = vld [vmem:[%s1115_s1 + $0x20] sm:$0xff] (!%p130_p10)  ;;  %v902_v7 = vmov (!%p130_p10), 0.0   ;;  %vm176_vm0 = vcmask (!%p130_p10), 130048  }
   0xf   : > { %133 = sbr.rel (%p130_p10) target bundleno = 278 (0x116), region = 28  ;;  %v708_v2 = vld [vmem:[%s1115_s1 + $0x48] sm:$0xff] (!%p130_p10)  ;;  %v728_v3 = vpack.c.bf16 (!%p130_p10), %v697_v1, %v695_v0  ;;  %v710_v4 = vld [vmem:[%s1115_s1 + $0x58] sm:$0xff] (!%p130_p10)  ;;  %v696_v6 = vld [vmem:[%s1115_s1 + $0x30] sm:$0xff] (!%p130_p10)  ;;  %250 = vmatprep.mubr.f32.mxu1 (!%p130_p10), %v902_v7  ;;  %444 = vmatprep.mubr.f32.mxu0 (!%p130_p10), %v902_v7  ;;  %s148_s24 = sand.u32 (!%p130_p10), 1, %s884_s10  }
  0x10   : > { %v736_v8 = vpack.c.bf16 (!%p130_p10), %v710_v4, %v708_v2  ;;  %v730_v9 = vpack.c.bf16 (!%p130_p10), %v696_v6, %v694_v5  ;;  %v707_v10 = vld [vmem:[%s1115_s1 + $0x40] sm:$0xff] (!%p130_p10)  ;;  %v709_v11 = vld [vmem:[%s1115_s1 + $0x50] sm:$0xff] (!%p130_p10)  ;;  %v163_v12 = vld [vmem:[%s1115_s1 + $0x8] sm:$0xff] (!%p130_p10)  ;;  %s762_s25 = smul.u32 (!%p130_p10), 48, %s148_s24  ;;  %s903_s5 = smov (!%p130_p10), [#allocation2]  }
  0x11   : > { %729 = vmatprep.subr.bf16.mxu1 (!%p130_p10), %v728_v3  ;;  %v738_v13 = vpack.c.bf16 (!%p130_p10), %v709_v11, %v707_v10  ;;  %v165_v14 = vld [vmem:[%s1115_s1 + $0x18] sm:$0xff] (!%p130_p10)  ;;  %v718_v15 = vld [vmem:[%s1115_s1 + $0x68] sm:$0xff] (!%p130_p10)  ;;  %v162_v19 = vld [vmem:[%s1115_s1] sm:$0xff] (!%p130_p10)  ;;  %s763_s27 = smul.u32 (!%p130_p10), 768, %s892_s12  ;;  %s826_s6 = sshll.u32 (!%p130_p10), %s903_s5, 4  ;;  %s827_s6 = int_to_ptr.vmem [resolvable:$false] %s826_s6 }
  0x12   : > { %v720_v16 = vld [vmem:[%s1115_s1 + $0x78] sm:$0xff] (!%p130_p10)  ;;  %737 = vmatprep.subr.bf16.mxu0 (!%p130_p10), %v736_v8  ;;  %731 = vmatpush1.bf16.msra.mxu1 (!%p130_p10), %v730_v9  ;;  %v732_v17 = vpack.c.bf16 (!%p130_p10), %v165_v14, %v163_v12  ;;  %v164_v20 = vld [vmem:[%s1115_s1 + $0x10] sm:$0xff] (!%p130_p10)  ;;  %v717_v21 = vld [vmem:[%s1115_s1 + $0x60] sm:$0xff] (!%p130_p10)  ;;  %s150_s26 = scalar_lea.vmem (!%p130_p10), [#allocation2], %s762_s25  ;;  %s828_s7 = scalar_lea.vmem (!%p130_p10), %s827_s6, 1536 }
  0x13   : > { %v740_v18 = vpack.c.bf16 (!%p130_p10), %v720_v16, %v718_v15  ;;  %739 = vmatpush1.bf16.msra.mxu0 (!%p130_p10), %v738_v13  ;;  %v734_v22 = vpack.c.bf16 (!%p130_p10), %v164_v20, %v162_v19  ;;  %v719_v23 = vld [vmem:[%s1115_s1 + $0x70] sm:$0xff] (!%p130_p10)  ;;  %s600_s28 = sshll.u32 (!%p130_p10), %s150_s26, 4  ;;  %s1064_s3 = scalar_lea.hbm (!%p130_p10), %s1116_s2, %s763_s27  ;;  %s1059_s28 = int_to_ptr.vmem [resolvable:$true] %s600_s28 }
  0x14   : > { %733 = vmatprep.subr.bf16.mxu1 (!%p130_p10), %v732_v17  ;;  %v742_v26 = vpack.c.bf16 (!%p130_p10), %v719_v23, %v717_v21  ;;  %s822_s4 = scalar_lea.vmem (!%p130_p10), %s1059_s28, 768  ;;  %p829_p1 = scmp.lt.s32.totalorder (!%p130_p10), %s1059_s28, %s827_s6 }
  0x15   : > { %741 = vmatprep.subr.bf16.mxu0 (!%p130_p10), %v740_v18  ;;  %p823_p12 = scmp.ne.s32.totalorder (!%p130_p10), %s1059_s28, %s822_s4  ;;  %p830_p2 = scmp.lt.s32.totalorder (!%p130_p10), %s828_s7, %s822_s4 }
  0x16   : > { %s152_s18 = scalar_select %p151_p11, %s892_s12, 7 }
  0x17   : > { %s1068_s12 = scalar_lea.sflag [#allocation3], %s148_s24  ;;  %p824_p13 = pnand %p823_p12, %p961_p4 }
  0x18   : > { %s727_s30 = sshll.u32 %s152_s18, 5  ;;  %p831_p3 = por %p830_p2, %p829_p1 }
  0x19   : > { %s1026_s18 = scalar_lea.vmem %s1114_s0, %s727_s30  ;;  %p825_p0 = pneg %p824_p13 }
  0x1a   : > { %v691_v24 = vld [vmem:[%s1026_s18 + $0x1] sm:$0xff]  ;;  %v692_v27 = vld [vmem:[%s1026_s18 + $0x9] sm:$0xff]  ;;  %v693_v29 = vld [vmem:[%s1026_s18 + $0x11] sm:$0xff] }
  0x1b   : > { %v704_v25 = vld [vmem:[%s1026_s18 + $0x2] sm:$0xff]  ;;  %698 = vmatmul.mubr.msk.f32.vlgmr.msra.gmra.mrb[0].mxu1 %vm176_vm0, %v691_v24  ;;  %v705_v28 = vld [vmem:[%s1026_s18 + $0xa] sm:$0xff]  ;;  %v706_v30 = vld [vmem:[%s1026_s18 + $0x12] sm:$0xff]  ;;  %p832_p5 = pnand %p831_p3, %p825_p0 }
  0x1c   : > { %711 = vmatmul.mubr.msk.f32.vlgmr.msra.gmra.mrb[0].mxu0 %vm176_vm0, %v704_v25  ;;  %735 = vmatpush1.bf16.msra.mxu1 %v734_v22  ;;  %v159_v31 = vld [vmem:[%s1026_s18] sm:$0xff]  ;;  %v160_v33 = vld [vmem:[%s1026_s18 + $0x8] sm:$0xff]  ;;  %v161_v35 = vld [vmem:[%s1026_s18 + $0x10] sm:$0xff] }
  0x1d   : > { %743 = vmatpush1.bf16.msra.mxu0 %v742_v26  ;;  %256 = vmatprep.mubr.f32.mxu1 %v902_v7  ;;  %v714_v32 = vld [vmem:[%s1026_s18 + $0x3] sm:$0xff]  ;;  %v715_v34 = vld [vmem:[%s1026_s18 + $0xb] sm:$0xff]  ;;  %v716_v36 = vld [vmem:[%s1026_s18 + $0x13] sm:$0xff] }
  0x1e   : > { %450 = vmatprep.mubr.f32.mxu0 %v902_v7 }
  0x1f   : > { %699 = vmatmul.mubr.msk.f32.gmra.mrb[2].mxu1 %vm176_vm0, %v692_v27 }
  0x20   : > { %712 = vmatmul.mubr.msk.f32.gmra.mrb[2].mxu0 %vm176_vm0, %v705_v28  ;;  %262 = vmatprep.mubr.f32.mxu1 %v902_v7 }
  0x21   : > { %456 = vmatprep.mubr.f32.mxu0 %v902_v7 }
  0x23   : > { %700 = vmatmul.mubr.msk.f32.gmra.mrb[4].mxu1 %vm176_vm0, %v693_v29 }
  0x24   : > { %713 = vmatmul.mubr.msk.f32.gmra.mrb[4].mxu0 %vm176_vm0, %v706_v30  ;;  %342 = vmatprep.mubr.f32.mxu1 %v902_v7 }
  0x25   : > { %552 = vmatprep.mubr.f32.mxu0 %v902_v7 }
  0x27   : > { %701 = vmatmul.mubr.msk.f32.vlgmr.msra.gmra.mrb[0].mxu1 %vm176_vm0, %v159_v31 }
  0x28   : > { %721 = vmatmul.mubr.msk.f32.vlgmr.msra.gmra.mrb[0].mxu0 %vm176_vm0, %v714_v32  ;;  %348 = vmatprep.mubr.f32.mxu1 %v902_v7 }
  0x29   : > { %558 = vmatprep.mubr.f32.mxu0 %v902_v7 }
  0x2b   : > { %702 = vmatmul.mubr.msk.f32.gmra.mrb[2].mxu1 %vm176_vm0, %v160_v33 }
  0x2c   : > { %722 = vmatmul.mubr.msk.f32.gmra.mrb[2].mxu0 %vm176_vm0, %v715_v34  ;;  %354 = vmatprep.mubr.f32.mxu1 %v902_v7 }
  0x2d   : > { %564 = vmatprep.mubr.f32.mxu0 %v902_v7 }
  0x2f   : > { %703 = vmatmul.mubr.msk.f32.gmra.mrb[4].mxu1 %vm176_vm0, %v161_v35 }
  0x30   : > { %723 = vmatmul.mubr.msk.f32.gmra.mrb[4].mxu0 %vm176_vm0, %v716_v36 }
  0xfa   : > { %v344_v37 = vpop.f32.mrb[0].mxu1 }
  0xfb   : > { %v554_v38 = vpop.f32.mrb[0].mxu0  ;;  %v346_v39 = vpop.f32.mrb[1].mxu1 }
  0xfc   : > { %v744_v40 = vadd.f32 %v554_v38, %v344_v37  ;;  %v556_v41 = vpop.f32.mrb[1].mxu0 }
  0xfd   : > { %v745_v42 = vadd.f32 %v556_v41, %v346_v39 }
  0xfe   : > { %577 = vst [vmem:[%s150_s26] sm:$0xff] %v744_v40  ;;  %v350_v43 = vpop.f32.mrb[2].mxu1 }
  0xff   : > { %578 = vst [vmem:[%s150_s26 + $0x8] sm:$0xff] %v745_v42  ;;  %v560_v44 = vpop.f32.mrb[2].mxu0  ;;  %v352_v45 = vpop.f32.mrb[3].mxu1 }
 0x100   : > { %v746_v46 = vadd.f32 %v560_v44, %v350_v43  ;;  %v562_v47 = vpop.f32.mrb[3].mxu0 }
 0x101   : > { %v747_v48 = vadd.f32 %v562_v47, %v352_v45 }
 0x102   : > { %579 = vst [vmem:[%s150_s26 + $0x10] sm:$0xff] %v746_v46  ;;  %v356_v49 = vpop.f32.mrb[4].mxu1 }
 0x103   : > { %580 = vst [vmem:[%s150_s26 + $0x18] sm:$0xff] %v747_v48  ;;  %v566_v50 = vpop.f32.mrb[4].mxu0  ;;  %v358_v51 = vpop.f32.mrb[5].mxu1 }
 0x104   : > { %v748_v52 = vadd.f32 %v566_v50, %v356_v49  ;;  %v568_v53 = vpop.f32.mrb[5].mxu0 }
 0x105   : > { %v749_v54 = vadd.f32 %v568_v53, %v358_v51 }
 0x106   : > { %581 = vst [vmem:[%s150_s26 + $0x20] sm:$0xff] %v748_v52 }
 0x107   : > { %582 = vst [vmem:[%s150_s26 + $0x28] sm:$0xff] %v749_v54 }
 0x108   : > { %835 = shalt.err (!%p832_p5)
}
 0x109   : > { %s836_s8 = scalar_lea.hbm %s1064_s3, 768  ;;  %s840_s18 = scalar_lea.hbm %s1116_s2, 6144 }
 0x10a   : > { %p837_p6 = scmp.ne.s32.totalorder %s1064_s3, %s836_s8  ;;  %p841_p10 = scmp.lt.u32.totalorder %s1064_s3, %s1116_s2 }
 0x10b   : > { %p842_p11 = scmp.lt.u32.totalorder %s840_s18, %s836_s8  ;;  %p844_p13 = scmp.lt.u32.totalorder %s836_s8, %s1064_s3 }
 0x10c   : > { %p838_p7 = pnand %p837_p6, %p961_p4 }
 0x10d   : > { %p843_p12 = por %p842_p11, %p841_p10 }
 0x10e   : > { %p839_p9 = pneg %p838_p7 }
 0x10f   : > { %p845_p0 = por %p844_p13, %p843_p12 }
 0x111   : > { %p846_p1 = pnand %p845_p0, %p839_p9 }
 0x113   : > { %849 = shalt.err (!%p846_p1)
}
 0x114   : > { %s904_s24 = smov 256   ;;  %s905_s25 = smov 16  }
 0x115   : > { %764 = dma.vmem_to_hbm [thread:$0]  (%p961_p4), %s1059_s28, 768, %s1064_s3, %s1068_s12, %s904_s24, %s904_s24, %s905_s25  }
 0x116 PF: > { %p770_p2 = scmp.ge.s32.totalorder %s900_s14, 2  ;;  %s615_s26 = sand.u32 1, %s880_s9  }
 0x117   : > { %s616_s27 = scalar_lea.sflag [#allocation3], %s615_s26 }
 0x118   : > { %p767_p3 = pnand %p770_p2, %p968_p8 }
 0x11a   : > { %875 = dma.done.wait (!%p767_p3), %s616_s27, 768  }
 0x11b   : > { %877 = vsyncadd (!%p767_p3), %s616_s27, 4294966528  ;;  %s15_s14 = sadd.s32 1, %s900_s14   ;;  %s1119_s9 = smov %s884_s10 }
 0x11c   : > { %p12_p5 = scmp.ge.s32.totalorder %s15_s14, 10   ;;  %s1120_s10 = smov %s888_s11 }
 0x11d   : > { %s1121_s11 = smov %s974_s22  ;;  %s1122_s12 = smov %s896_s13 }
 0x11e   : > { %s1123_s13 = smov %s1125_s17  ;;  %14 = sbr.rel (!%p12_p5) target bundleno = 4 (0x4), region = 70 }
 0x125   :  { %621 = vsyncpa [#allocation3], 1 }
 0x126   :  { %623 = vsyncpa [#allocation3 + $0x1], 1 }

</bundles_post_ra>
